<compile_context>
chip_gen: v5e
topology: v5e:2x2
jax: 0.10.0
libtpu: 0.0.40
codegen_flags: <defaults>
</compile_context>

<pallas_src>
import jax
import jax.numpy as jnp
import numpy as np
from jax import lax
from jax.experimental import pallas as pl
from jax.experimental.pallas import tpu as pltpu

EPS = 1e-5       # nn.BatchNorm2d default eps
SLOPE = 0.01     # nn.LeakyReLU(0.01)


# ----------------------------------------------------------------------------- kernel
def init_res_kernel(xpad_ref, b0_ref, b1_ref, b2_ref, bn_ref, out_ref, pad_ref):
    # xpad_ref : (H+2, W+2)          zero-padded single-channel input (one batch elem)
    # b0_ref   : (3, W+2, W*C)       banded weights of the Cin=1 init conv (natural order)
    # b1/b2_ref: (3, W*C+2C, W*C)    banded weights of the CxC res convs (interior-first K)
    # bn_ref   : (4, W*C)            [scale1, shift1, scale2, shift2] tiled per pixel
    # out_ref  : (H, W*C)            lane-dense output block (also residual accumulator)
    # pad_ref  : (H+2, W*C+2C)       VMEM scratch: padded activation, halo lanes at the end
    f32 = jnp.float32
    H = xpad_ref.shape[0] - 2
    WC = out_ref.shape[1]                  # W * C  (interior lanes)
    WpC = pad_ref.shape[1]                 # W * C + 2 * C
    halo = WpC - WC                        # 2 * C

    # --- Init.conv : Conv2d(1, C, 3, padding=1, bias=False) -> 3 banded MXU matmuls -----
    y = jnp.zeros((H, WC), f32)
    for ky in range(3):
        y = y + jnp.dot(xpad_ref[ky:ky + H, :], b0_ref[ky],
                        preferred_element_type=f32)

    # --- Init.drop : Dropout2d(0.2) -> identity in eval mode ----------------------------
    # TODO(synk): train-mode Dropout2d (per-channel Bernoulli mask + 1/(1-p)) not implemented.

    # residual accumulator lives directly in the lane-dense output block
    out_ref[...] = y

    # --- zero only the halo of the padded-activation scratch (interior is overwritten) --
    pad_ref[pl.ds(0, 1), :] = jnp.zeros((1, WpC), f32)            # top halo row
    pad_ref[pl.ds(H + 1, 1), :] = jnp.zeros((1, WpC), f32)        # bottom halo row
    pad_ref[:, pl.ds(WC, halo)] = jnp.zeros((H + 2, halo), f32)   # left+right halo lanes

    bn = bn_ref[...]                                              # (4, W*C)

    def bn_lrelu_conv(z, scale, shift, b_ref):
        # folded eval-mode BatchNorm2d + LeakyReLU(0.01): one lane-wise FMA + select
        a = z * scale + shift
        a = jnp.where(a > 0, a, SLOPE * a)
        # interior lanes [0, WC): lane-aligned full-width store (unmasked when WC % 128 == 0)
        pad_ref[pl.ds(1, H), pl.ds(0, WC)] = a
        acc = jnp.zeros((H, WC), f32)
        for ky in range(3):
            acc = acc + jnp.dot(pad_ref[ky:ky + H, :], b_ref[ky],
                                preferred_element_type=f32)
        return acc

    # --- Res.res_block: BN -> LeakyReLU -> Conv3x3, twice -------------------------------
    y = bn_lrelu_conv(y, bn[0:1, :], bn[1:2, :], b1_ref)
    y = bn_lrelu_conv(y, bn[2:3, :], bn[3:4, :], b2_ref)

    # --- residual add: img_in + res_block(img_in) ---------------------------------------
    out_ref[...] += y


# ----------------------------------------------------------------------------- wrapper
def _band_matrices(w_hwio, W, interior_first):
    """(3, 3, Cin, Cout) HWIO conv weights -> (3, (W+2)*Cin, W*Cout) banded matrices.

    B[ky, wi*Cin+ci, w*Cout+co] = w[ky, wi-w, ci, co] when 0 <= wi-w <= 2, else 0, so
      conv(x)[h, w*Cout+co] = sum_ky  xpad_row_layout[h+ky, :] @ B[ky].

    interior_first=True permutes the K (row) blocks so interior pixels wi=1..W come
    first and the two halo columns (wi=0, wi=W+1) sit at the end -- matching the
    kernel's pad_ref lane layout and enabling lane-aligned activation stores.
    """
    kh, kw, cin, cout = w_hwio.shape
    E = jnp.stack([jnp.eye(W + 2, W, -kx, dtype=w_hwio.dtype) for kx in range(kw)])
    B = jnp.einsum("kuw,ykio->yuiwo", E, w_hwio)     # (ky, wi, ci, w, co)
    if interior_first:
        order = jnp.array(list(range(1, W + 1)) + [0, W + 1], dtype=jnp.int32)
        B = B[:, order]
    return B.reshape(kh, (W + 2) * cin, W * cout)


def init_forward(x_nchw, params):
    """Full Init.forward (eval mode). Input (N, 1, H, W) float32 -> (N, C, H, W)."""
    x = x_nchw.astype(jnp.float32)
    N, _, H, W = x.shape
    C = params["w0"].shape[-1]
    WC = W * C

    # input halo added once in the wrapper (Cin == 1, so drop the channel dim)
    xpad = jnp.pad(x[:, 0, :, :], ((0, 0), (1, 1), (1, 1)))              # (N, H+2, W+2)

    # banded conv-weight matrices
    b0 = _band_matrices(params["w0"], W, interior_first=False)           # (3, W+2,     W*C)
    b1 = _band_matrices(params["w1"], W, interior_first=True)            # (3, W*C+2C,  W*C)
    b2 = _band_matrices(params["w2"], W, interior_first=True)

    # fold BatchNorm (eval mode) into a single per-lane scale / shift
    s1 = params["g1"] * lax.rsqrt(params["v1"] + EPS)
    t1 = params["b1"] - params["m1"] * s1
    s2 = params["g2"] * lax.rsqrt(params["v2"] + EPS)
    t2 = params["b2"] - params["m2"] * s2
    bn = jnp.concatenate([jnp.tile(s1, (1, W)), jnp.tile(t1, (1, W)),
                          jnp.tile(s2, (1, W)), jnp.tile(t2, (1, W))], axis=0)  # (4, W*C)

    grid_spec = pltpu.PrefetchScalarGridSpec(
        num_scalar_prefetch=0,
        grid=(N,),
        in_specs=[
            pl.BlockSpec((None, H + 2, W + 2), lambda n: (n, 0, 0)),
            pl.BlockSpec((3, W + 2, WC), lambda n: (0, 0, 0)),
            pl.BlockSpec((3, WC + 2 * C, WC), lambda n: (0, 0, 0)),
            pl.BlockSpec((3, WC + 2 * C, WC), lambda n: (0, 0, 0)),
            pl.BlockSpec((4, WC), lambda n: (0, 0)),
        ],
        out_specs=pl.BlockSpec((None, H, WC), lambda n: (n, 0, 0)),
        scratch_shapes=[pltpu.VMEM((H + 2, WC + 2 * C), jnp.float32)],
    )

    out = pl.pallas_call(
        init_res_kernel,
        out_shape=jax.ShapeDtypeStruct((N, H, WC), jnp.float32),
        grid_spec=grid_spec,
        compiler_params=pltpu.CompilerParams(
            dimension_semantics=("parallel",),        # shard batch across TCs on v7x
            vmem_limit_bytes=32 * 1024 * 1024,        # fits v5e/v6e/v7x scoped budgets
        ),
    )(xpad, b0, b1, b2, bn)

    # (N, H, W*C) -> (N, H, W, C) -> (N, C, H, W)
    return jnp.transpose(out.reshape(N, H, W, C), (0, 3, 1, 2))


# ----------------------------------------------------------------------------- reference
def _bn_lrelu(x, g, b, m, v):
    z = (x - m) * (g * lax.rsqrt(v + EPS)) + b
    return jnp.where(z > 0, z, SLOPE * z)


def ref_forward(x_nchw, params):
    """Pure-JAX reference (lax conv) for correctness checking."""
    x = jnp.transpose(x_nchw, (0, 2, 3, 1)).astype(jnp.float32)
    dn = ("NHWC", "HWIO", "NHWC")

    def conv(z, w):
        return lax.conv_general_dilated(z, w, (1, 1), "SAME", dimension_numbers=dn)

    y = conv(x, params["w0"])
    r = y
    a = _bn_lrelu(y, params["g1"], params["b1"], params["m1"], params["v1"])
    y = conv(a, params["w1"])
    a = _bn_lrelu(y, params["g2"], params["b2"], params["m2"], params["v2"])
    y = conv(a, params["w2"])
    return jnp.transpose(r + y, (0, 3, 1, 2))


# ----------------------------------------------------------------------------- main
if __name__ == "__main__":
    filters = 8
    N, H, W = 2, 16, 16

    key = jax.random.PRNGKey(0)
    ks = jax.random.split(key, 12)
    f32 = jnp.float32
    params = {
        # conv weights, HWIO layout (PyTorch OIHW transposed)
        "w0": 0.3 * jax.random.normal(ks[0], (3, 3, 1, filters), f32),
        "w1": 0.1 * jax.random.normal(ks[1], (3, 3, filters, filters), f32),
        "w2": 0.1 * jax.random.normal(ks[2], (3, 3, filters, filters), f32),
        # BatchNorm params / running stats (eval mode), shaped (1, C)
        "g1": 1.0 + 0.1 * jax.random.normal(ks[3], (1, filters), f32),
        "b1": 0.1 * jax.random.normal(ks[4], (1, filters), f32),
        "m1": 0.1 * jax.random.normal(ks[5], (1, filters), f32),
        "v1": jax.random.uniform(ks[6], (1, filters), f32, 0.5, 1.5),
        "g2": 1.0 + 0.1 * jax.random.normal(ks[7], (1, filters), f32),
        "b2": 0.1 * jax.random.normal(ks[8], (1, filters), f32),
        "m2": 0.1 * jax.random.normal(ks[9], (1, filters), f32),
        "v2": jax.random.uniform(ks[10], (1, filters), f32, 0.5, 1.5),
    }

    x = jax.random.normal(ks[11], (N, 1, H, W), f32)

    out = jax.block_until_ready(init_forward(x, params))
    ref = jax.block_until_ready(ref_forward(x, params))
    np.testing.assert_allclose(np.asarray(out), np.asarray(ref), rtol=1e-3, atol=1e-3)
    print("KERNEL_OK")
</pallas_src>

<mosaic_0001>
module attributes {stable_mosaic.version = 11 : i64} {
  func.func @init_res_kernel(%arg0: i32, %arg1: memref<1x18x18xf32, #tpu.memory_space<vmem>>, %arg2: memref<3x18x128xf32, #tpu.memory_space<vmem>>, %arg3: memref<3x144x128xf32, #tpu.memory_space<vmem>>, %arg4: memref<3x144x128xf32, #tpu.memory_space<vmem>>, %arg5: memref<4x128xf32, #tpu.memory_space<vmem>>, %arg6: memref<1x16x128xf32, #tpu.memory_space<vmem>>, %arg7: memref<18x144xf32, #tpu.memory_space<vmem>>) attributes {dimension_semantics = [#tpu.dimension_semantics<parallel>], iteration_bounds = array<i64: 2>, scalar_prefetch = 0 : i64, scratch_operands = 1 : i64, tpu.core_type = #tpu.core_type<tc>, window_params = [{transform_indices = @transform_0, window_bounds = array<i64: 1, 18, 18>}, {pipeline_mode = #tpu.pipeline_mode<synchronous>, transform_indices = @transform_1, window_bounds = array<i64: 3, 18, 128>}, {pipeline_mode = #tpu.pipeline_mode<synchronous>, transform_indices = @transform_2, window_bounds = array<i64: 3, 144, 128>}, {pipeline_mode = #tpu.pipeline_mode<synchronous>, transform_indices = @transform_3, window_bounds = array<i64: 3, 144, 128>}, {pipeline_mode = #tpu.pipeline_mode<synchronous>, transform_indices = @transform_4, window_bounds = array<i64: 4, 128>}, {transform_indices = @transform_5, window_bounds = array<i64: 1, 16, 128>}]} {
    %cst = arith.constant 0.000000e+00 : f32
    %0 = vector.broadcast %cst : f32 to vector<16x128xf32>
    %c0 = arith.constant 0 : index
    %c0_0 = arith.constant 0 : index
    %c0_1 = arith.constant 0 : index
    %1 = vector.load %arg1[%c0, %c0_0, %c0_1] : memref<1x18x18xf32, #tpu.memory_space<vmem>>, vector<1x16x18xf32>
    %2 = vector.shape_cast %1 : vector<1x16x18xf32> to vector<16x18xf32>
    %c0_2 = arith.constant 0 : index
    %c0_3 = arith.constant 0 : index
    %c0_4 = arith.constant 0 : index
    %3 = vector.load %arg2[%c0_2, %c0_3, %c0_4] : memref<3x18x128xf32, #tpu.memory_space<vmem>>, vector<1x18x128xf32>
    %4 = vector.shape_cast %3 : vector<1x18x128xf32> to vector<18x128xf32>
    %cst_5 = arith.constant dense<0.000000e+00> : vector<16x128xf32>
    %5 = tpu.matmul %2, %4, %cst_5 {dimension_numbers = #tpu.dot_dimension_numbers<[1], [0], [0], [1], [0, 0, 1, 1], [], []>} : vector<16x18xf32>, vector<18x128xf32>, vector<16x128xf32> -> vector<16x128xf32>
    %6 = arith.addf %0, %5 : vector<16x128xf32>
    %c0_6 = arith.constant 0 : index
    %c1 = arith.constant 1 : index
    %c0_7 = arith.constant 0 : index
    %7 = vector.load %arg1[%c0_6, %c1, %c0_7] : memref<1x18x18xf32, #tpu.memory_space<vmem>>, vector<1x16x18xf32>
    %8 = vector.shape_cast %7 : vector<1x16x18xf32> to vector<16x18xf32>
    %c1_8 = arith.constant 1 : index
    %c0_9 = arith.constant 0 : index
    %c0_10 = arith.constant 0 : index
    %9 = vector.load %arg2[%c1_8, %c0_9, %c0_10] : memref<3x18x128xf32, #tpu.memory_space<vmem>>, vector<1x18x128xf32>
    %10 = vector.shape_cast %9 : vector<1x18x128xf32> to vector<18x128xf32>
    %cst_11 = arith.constant dense<0.000000e+00> : vector<16x128xf32>
    %11 = tpu.matmul %8, %10, %cst_11 {dimension_numbers = #tpu.dot_dimension_numbers<[1], [0], [0], [1], [0, 0, 1, 1], [], []>} : vector<16x18xf32>, vector<18x128xf32>, vector<16x128xf32> -> vector<16x128xf32>
    %12 = arith.addf %6, %11 : vector<16x128xf32>
    %c0_12 = arith.constant 0 : index
    %c2 = arith.constant 2 : index
    %c0_13 = arith.constant 0 : index
    %13 = vector.load %arg1[%c0_12, %c2, %c0_13] : memref<1x18x18xf32, #tpu.memory_space<vmem>>, vector<1x16x18xf32>
    %14 = vector.shape_cast %13 : vector<1x16x18xf32> to vector<16x18xf32>
    %c2_14 = arith.constant 2 : index
    %c0_15 = arith.constant 0 : index
    %c0_16 = arith.constant 0 : index
    %15 = vector.load %arg2[%c2_14, %c0_15, %c0_16] : memref<3x18x128xf32, #tpu.memory_space<vmem>>, vector<1x18x128xf32>
    %16 = vector.shape_cast %15 : vector<1x18x128xf32> to vector<18x128xf32>
    %cst_17 = arith.constant dense<0.000000e+00> : vector<16x128xf32>
    %17 = tpu.matmul %14, %16, %cst_17 {dimension_numbers = #tpu.dot_dimension_numbers<[1], [0], [0], [1], [0, 0, 1, 1], [], []>} : vector<16x18xf32>, vector<18x128xf32>, vector<16x128xf32> -> vector<16x128xf32>
    %18 = arith.addf %12, %17 : vector<16x128xf32>
    %c0_18 = arith.constant 0 : index
    %c0_19 = arith.constant 0 : index
    %c0_20 = arith.constant 0 : index
    %19 = vector.load %arg6[%c0_18, %c0_19, %c0_20] : memref<1x16x128xf32, #tpu.memory_space<vmem>>, vector<1x16x128xf32>
    %20 = vector.shape_cast %19 : vector<1x16x128xf32> to vector<16x128xf32>
    %21 = vector.shape_cast %18 : vector<16x128xf32> to vector<1x16x128xf32>
    tpu.vector_store %arg6[%c0_18, %c0_19, %c0_20], %21 {strides = array<i32>} : memref<1x16x128xf32, #tpu.memory_space<vmem>>, vector<1x16x128xf32>,
    %cst_21 = arith.constant 0.000000e+00 : f32
    %22 = vector.broadcast %cst_21 : f32 to vector<1x144xf32>
    %c0_22 = arith.constant 0 : index
    %c0_23 = arith.constant 0 : index
    %23 = vector.load %arg7[%c0_22, %c0_23] : memref<18x144xf32, #tpu.memory_space<vmem>>, vector<1x144xf32>
    tpu.vector_store %arg7[%c0_22, %c0_23], %22 {strides = array<i32>} : memref<18x144xf32, #tpu.memory_space<vmem>>, vector<1x144xf32>,
    %cst_24 = arith.constant 0.000000e+00 : f32
    %24 = vector.broadcast %cst_24 : f32 to vector<1x144xf32>
    %c17 = arith.constant 17 : index
    %c0_25 = arith.constant 0 : index
    %25 = vector.load %arg7[%c17, %c0_25] : memref<18x144xf32, #tpu.memory_space<vmem>>, vector<1x144xf32>
    tpu.vector_store %arg7[%c17, %c0_25], %24 {strides = array<i32>} : memref<18x144xf32, #tpu.memory_space<vmem>>, vector<1x144xf32>,
    %cst_26 = arith.constant 0.000000e+00 : f32
    %26 = vector.broadcast %cst_26 : f32 to vector<18x16xf32>
    %c0_27 = arith.constant 0 : index
    %c128 = arith.constant 128 : index
    %27 = vector.load %arg7[%c0_27, %c128] : memref<18x144xf32, #tpu.memory_space<vmem>>, vector<18x16xf32>
    tpu.vector_store %arg7[%c0_27, %c128], %26 {strides = array<i32>} : memref<18x144xf32, #tpu.memory_space<vmem>>, vector<18x16xf32>,
    %c0_28 = arith.constant 0 : index
    %c0_29 = arith.constant 0 : index
    %28 = vector.load %arg5[%c0_28, %c0_29] : memref<4x128xf32, #tpu.memory_space<vmem>>, vector<4x128xf32>
    %29 = vector.extract_strided_slice %28 {offsets = [0, 0], sizes = [1, 128], strides = [1, 1]} : vector<4x128xf32> to vector<1x128xf32>
    %30 = vector.extract_strided_slice %28 {offsets = [1, 0], sizes = [1, 128], strides = [1, 1]} : vector<4x128xf32> to vector<1x128xf32>
    %31 = vector.broadcast %29 : vector<1x128xf32> to vector<16x128xf32>
    %32 = arith.mulf %18, %31 : vector<16x128xf32>
    %33 = vector.broadcast %30 : vector<1x128xf32> to vector<16x128xf32>
    %34 = arith.addf %32, %33 : vector<16x128xf32>
    %cst_30 = arith.constant 0.000000e+00 : f32
    %35 = vector.broadcast %cst_30 : f32 to vector<16x128xf32>
    %36 = arith.cmpf ogt, %34, %35 : vector<16x128xf32>
    %cst_31 = arith.constant 0.00999999977 : f32
    %37 = vector.broadcast %cst_31 : f32 to vector<16x128xf32>
    %38 = arith.mulf %37, %34 : vector<16x128xf32>
    %39 = arith.select %36, %34, %38 : vector<16x128xi1>, vector<16x128xf32>
    %c1_32 = arith.constant 1 : index
    %c0_33 = arith.constant 0 : index
    %40 = vector.load %arg7[%c1_32, %c0_33] : memref<18x144xf32, #tpu.memory_space<vmem>>, vector<16x128xf32>
    tpu.vector_store %arg7[%c1_32, %c0_33], %39 {strides = array<i32>} : memref<18x144xf32, #tpu.memory_space<vmem>>, vector<16x128xf32>,
    %cst_34 = arith.constant 0.000000e+00 : f32
    %41 = vector.broadcast %cst_34 : f32 to vector<16x128xf32>
    %c0_35 = arith.constant 0 : index
    %c0_36 = arith.constant 0 : index
    %42 = vector.load %arg7[%c0_35, %c0_36] : memref<18x144xf32, #tpu.memory_space<vmem>>, vector<16x144xf32>
    %c0_37 = arith.constant 0 : index
    %c0_38 = arith.constant 0 : index
    %c0_39 = arith.constant 0 : index
    %43 = vector.load %arg3[%c0_37, %c0_38, %c0_39] : memref<3x144x128xf32, #tpu.memory_space<vmem>>, vector<1x144x128xf32>
    %44 = vector.shape_cast %43 : vector<1x144x128xf32> to vector<144x128xf32>
    %cst_40 = arith.constant dense<0.000000e+00> : vector<16x128xf32>
    %45 = tpu.matmul %42, %44, %cst_40 {dimension_numbers = #tpu.dot_dimension_numbers<[1], [0], [0], [1], [0, 0, 1, 1], [], []>} : vector<16x144xf32>, vector<144x128xf32>, vector<16x128xf32> -> vector<16x128xf32>
    %46 = arith.addf %41, %45 : vector<16x128xf32>
    %c1_41 = arith.constant 1 : index
    %c0_42 = arith.constant 0 : index
    %47 = vector.load %arg7[%c1_41, %c0_42] : memref<18x144xf32, #tpu.memory_space<vmem>>, vector<16x144xf32>
    %c1_43 = arith.constant 1 : index
    %c0_44 = arith.constant 0 : index
    %c0_45 = arith.constant 0 : index
    %48 = vector.load %arg3[%c1_43, %c0_44, %c0_45] : memref<3x144x128xf32, #tpu.memory_space<vmem>>, vector<1x144x128xf32>
    %49 = vector.shape_cast %48 : vector<1x144x128xf32> to vector<144x128xf32>
    %cst_46 = arith.constant dense<0.000000e+00> : vector<16x128xf32>
    %50 = tpu.matmul %47, %49, %cst_46 {dimension_numbers = #tpu.dot_dimension_numbers<[1], [0], [0], [1], [0, 0, 1, 1], [], []>} : vector<16x144xf32>, vector<144x128xf32>, vector<16x128xf32> -> vector<16x128xf32>
    %51 = arith.addf %46, %50 : vector<16x128xf32>
    %c2_47 = arith.constant 2 : index
    %c0_48 = arith.constant 0 : index
    %52 = vector.load %arg7[%c2_47, %c0_48] : memref<18x144xf32, #tpu.memory_space<vmem>>, vector<16x144xf32>
    %c2_49 = arith.constant 2 : index
    %c0_50 = arith.constant 0 : index
    %c0_51 = arith.constant 0 : index
    %53 = vector.load %arg3[%c2_49, %c0_50, %c0_51] : memref<3x144x128xf32, #tpu.memory_space<vmem>>, vector<1x144x128xf32>
    %54 = vector.shape_cast %53 : vector<1x144x128xf32> to vector<144x128xf32>
    %cst_52 = arith.constant dense<0.000000e+00> : vector<16x128xf32>
    %55 = tpu.matmul %52, %54, %cst_52 {dimension_numbers = #tpu.dot_dimension_numbers<[1], [0], [0], [1], [0, 0, 1, 1], [], []>} : vector<16x144xf32>, vector<144x128xf32>, vector<16x128xf32> -> vector<16x128xf32>
    %56 = arith.addf %51, %55 : vector<16x128xf32>
    %57 = vector.extract_strided_slice %28 {offsets = [2, 0], sizes = [1, 128], strides = [1, 1]} : vector<4x128xf32> to vector<1x128xf32>
    %58 = vector.extract_strided_slice %28 {offsets = [3, 0], sizes = [1, 128], strides = [1, 1]} : vector<4x128xf32> to vector<1x128xf32>
    %59 = vector.broadcast %57 : vector<1x128xf32> to vector<16x128xf32>
    %60 = arith.mulf %56, %59 : vector<16x128xf32>
    %61 = vector.broadcast %58 : vector<1x128xf32> to vector<16x128xf32>
    %62 = arith.addf %60, %61 : vector<16x128xf32>
    %cst_53 = arith.constant 0.000000e+00 : f32
    %63 = vector.broadcast %cst_53 : f32 to vector<16x128xf32>
    %64 = arith.cmpf ogt, %62, %63 : vector<16x128xf32>
    %cst_54 = arith.constant 0.00999999977 : f32
    %65 = vector.broadcast %cst_54 : f32 to vector<16x128xf32>
    %66 = arith.mulf %65, %62 : vector<16x128xf32>
    %67 = arith.select %64, %62, %66 : vector<16x128xi1>, vector<16x128xf32>
    %c1_55 = arith.constant 1 : index
    %c0_56 = arith.constant 0 : index
    %68 = vector.load %arg7[%c1_55, %c0_56] : memref<18x144xf32, #tpu.memory_space<vmem>>, vector<16x128xf32>
    tpu.vector_store %arg7[%c1_55, %c0_56], %67 {strides = array<i32>} : memref<18x144xf32, #tpu.memory_space<vmem>>, vector<16x128xf32>,
    %cst_57 = arith.constant 0.000000e+00 : f32
    %69 = vector.broadcast %cst_57 : f32 to vector<16x128xf32>
    %c0_58 = arith.constant 0 : index
    %c0_59 = arith.constant 0 : index
    %70 = vector.load %arg7[%c0_58, %c0_59] : memref<18x144xf32, #tpu.memory_space<vmem>>, vector<16x144xf32>
    %c0_60 = arith.constant 0 : index
    %c0_61 = arith.constant 0 : index
    %c0_62 = arith.constant 0 : index
    %71 = vector.load %arg4[%c0_60, %c0_61, %c0_62] : memref<3x144x128xf32, #tpu.memory_space<vmem>>, vector<1x144x128xf32>
    %72 = vector.shape_cast %71 : vector<1x144x128xf32> to vector<144x128xf32>
    %cst_63 = arith.constant dense<0.000000e+00> : vector<16x128xf32>
    %73 = tpu.matmul %70, %72, %cst_63 {dimension_numbers = #tpu.dot_dimension_numbers<[1], [0], [0], [1], [0, 0, 1, 1], [], []>} : vector<16x144xf32>, vector<144x128xf32>, vector<16x128xf32> -> vector<16x128xf32>
    %74 = arith.addf %69, %73 : vector<16x128xf32>
    %c1_64 = arith.constant 1 : index
    %c0_65 = arith.constant 0 : index
    %75 = vector.load %arg7[%c1_64, %c0_65] : memref<18x144xf32, #tpu.memory_space<vmem>>, vector<16x144xf32>
    %c1_66 = arith.constant 1 : index
    %c0_67 = arith.constant 0 : index
    %c0_68 = arith.constant 0 : index
    %76 = vector.load %arg4[%c1_66, %c0_67, %c0_68] : memref<3x144x128xf32, #tpu.memory_space<vmem>>, vector<1x144x128xf32>
    %77 = vector.shape_cast %76 : vector<1x144x128xf32> to vector<144x128xf32>
    %cst_69 = arith.constant dense<0.000000e+00> : vector<16x128xf32>
    %78 = tpu.matmul %75, %77, %cst_69 {dimension_numbers = #tpu.dot_dimension_numbers<[1], [0], [0], [1], [0, 0, 1, 1], [], []>} : vector<16x144xf32>, vector<144x128xf32>, vector<16x128xf32> -> vector<16x128xf32>
    %79 = arith.addf %74, %78 : vector<16x128xf32>
    %c2_70 = arith.constant 2 : index
    %c0_71 = arith.constant 0 : index
    %80 = vector.load %arg7[%c2_70, %c0_71] : memref<18x144xf32, #tpu.memory_space<vmem>>, vector<16x144xf32>
    %c2_72 = arith.constant 2 : index
    %c0_73 = arith.constant 0 : index
    %c0_74 = arith.constant 0 : index
    %81 = vector.load %arg4[%c2_72, %c0_73, %c0_74] : memref<3x144x128xf32, #tpu.memory_space<vmem>>, vector<1x144x128xf32>
    %82 = vector.shape_cast %81 : vector<1x144x128xf32> to vector<144x128xf32>
    %cst_75 = arith.constant dense<0.000000e+00> : vector<16x128xf32>
    %83 = tpu.matmul %80, %82, %cst_75 {dimension_numbers = #tpu.dot_dimension_numbers<[1], [0], [0], [1], [0, 0, 1, 1], [], []>} : vector<16x144xf32>, vector<144x128xf32>, vector<16x128xf32> -> vector<16x128xf32>
    %84 = arith.addf %79, %83 : vector<16x128xf32>
    %c0_76 = arith.constant 0 : index
    %c0_77 = arith.constant 0 : index
    %c0_78 = arith.constant 0 : index
    %85 = vector.load %arg6[%c0_76, %c0_77, %c0_78] : memref<1x16x128xf32, #tpu.memory_space<vmem>>, vector<1x16x128xf32>
    %86 = vector.shape_cast %85 : vector<1x16x128xf32> to vector<16x128xf32>
    %87 = arith.addf %86, %84 : vector<16x128xf32>
    %c0_79 = arith.constant 0 : index
    %c0_80 = arith.constant 0 : index
    %c0_81 = arith.constant 0 : index
    %88 = vector.load %arg6[%c0_79, %c0_80, %c0_81] : memref<1x16x128xf32, #tpu.memory_space<vmem>>, vector<1x16x128xf32>
    %89 = vector.shape_cast %88 : vector<1x16x128xf32> to vector<16x128xf32>
    %90 = vector.shape_cast %87 : vector<16x128xf32> to vector<1x16x128xf32>
    tpu.vector_store %arg6[%c0_79, %c0_80, %c0_81], %90 {strides = array<i32>} : memref<1x16x128xf32, #tpu.memory_space<vmem>>, vector<1x16x128xf32>,
    return
  }
  func.func @transform_0(%arg0: i32) -> (i32, i32, i32) {
    %c0_i32 = arith.constant 0 : i32
    %c0_i32_0 = arith.constant 0 : i32
    %c0_i32_1 = arith.constant 0 : i32
    return %arg0, %c0_i32, %c0_i32_0 : i32, i32, i32
  }
  func.func @transform_1(%arg0: i32) -> (i32, i32, i32) {
    %c0_i32 = arith.constant 0 : i32
    %c0_i32_0 = arith.constant 0 : i32
    %c0_i32_1 = arith.constant 0 : i32
    %c0_i32_2 = arith.constant 0 : i32
    return %c0_i32, %c0_i32_0, %c0_i32_1 : i32, i32, i32
  }
  func.func @transform_2(%arg0: i32) -> (i32, i32, i32) {
    %c0_i32 = arith.constant 0 : i32
    %c0_i32_0 = arith.constant 0 : i32
    %c0_i32_1 = arith.constant 0 : i32
    %c0_i32_2 = arith.constant 0 : i32
    return %c0_i32, %c0_i32_0, %c0_i32_1 : i32, i32, i32
  }
  func.func @transform_3(%arg0: i32) -> (i32, i32, i32) {
    %c0_i32 = arith.constant 0 : i32
    %c0_i32_0 = arith.constant 0 : i32
    %c0_i32_1 = arith.constant 0 : i32
    %c0_i32_2 = arith.constant 0 : i32
    return %c0_i32, %c0_i32_0, %c0_i32_1 : i32, i32, i32
  }
  func.func @transform_4(%arg0: i32) -> (i32, i32) {
    %c0_i32 = arith.constant 0 : i32
    %c0_i32_0 = arith.constant 0 : i32
    %c0_i32_1 = arith.constant 0 : i32
    return %c0_i32, %c0_i32_0 : i32, i32
  }
  func.func @transform_5(%arg0: i32) -> (i32, i32, i32) {
    %c0_i32 = arith.constant 0 : i32
    %c0_i32_0 = arith.constant 0 : i32
    %c0_i32_1 = arith.constant 0 : i32
    return %arg0, %c0_i32, %c0_i32_0 : i32, i32, i32
  }
}

</mosaic_0001>

<bundles_post_ra>
// kernel: tpu_custom_call.1
= control target key start
LH: loop header
LB: loop body
LE: loop exit
PB: predicated region body
PF: predicated region fallthrough
CT: control target
= control target key end

     0   :  { %10 = vsyncpa [#allocation4], 0  ;;  %s1562_s0 = inlined_call_operand.vmem [shape: f32[2,18,18], index: 0, kind: input, shape index: {}]   ;;  %s1563_s1 = inlined_call_operand.vmem [shape: f32[3,18,128], index: 1, kind: input, shape index: {}]   ;;  %s1564_s2 = inlined_call_operand.hbm [shape: f32[3,144,128], index: 2, kind: input, shape index: {}]   ;;  %s1565_s3 = inlined_call_operand.hbm [shape: f32[3,144,128], index: 3, kind: input, shape index: {}]   ;;  %s1566_s4 = inlined_call_operand.vmem [shape: f32[4,128], index: 4, kind: input, shape index: {}]   ;;  %s1567_s5 = inlined_call_operand.hbm [shape: f32[2,16,128], index: 5, kind: output, shape index: {}]  }
   0x1   :  { %11 = vsyncpa [#allocation7], 0 }
   0x2   :  { %12 = vsyncpa [#allocation5], 0 }
   0x3   :  { %14 = vsyncpa [#allocation5 + $0x1], 0  ;;  %s1334_s18 = smov 0   ;;  %s1336_s19 = smov 0  }
   0x4   :  { %s1338_s20 = smov 0   ;;  %s1340_s21 = smov 0  }
   0x5 LB: > { %s1355_s22 = sadd.s32 4294967295, %s1295_s21   ;;  %s1056_s23 = sadd.s32 4294967294, %s1295_s21   ;;  %s1295_s21 = sphi %s1340_s21, %s1574_s21   ;;  %s1291_s20 = sphi %s1338_s20, %s1573_s20   ;;  %s1287_s19 = sphi %s1336_s19, %s1572_s19   ;;  %s1283_s18 = sphi %s1334_s18, %s1571_s18  }
   0x6   : > { %s1359_s24 = sadd.s32 1, %s1295_s21   ;;  %s137_s25 = sadd.s32 1, %s1291_s20 }
   0x7   : > { %s134_s26 = ssub.s32 %s1295_s21, %s1359_s24  ;;  %p147_p0 = scmp.ne.s32.totalorder %s1291_s20, %s1287_s19 }
   0x8   : > { %p135_p1 = scmp.eq.s32.totalorder %s134_s26, 0  ;;  %p148_p2 = scmp.eq.s32.totalorder %s1355_s22, 1 }
   0x9   : > { %p153_p3 = scmp.ne.s32.totalorder %s1287_s19, %s1283_s18  ;;  %p154_p4 = scmp.eq.s32.totalorder %s1056_s23, 1 }
   0xa   : > { %s1370_s27 = scalar_select %p135_p1, %s1291_s20, %s137_s25  }
   0xb   : > { %p1372_p5 = por %p148_p2, %p147_p0  ;;  %p1376_p6 = por %p154_p4, %p153_p3 }
   0xc   : > { %p1057_p7 = scmp.ge.s32.totalorder %s1295_s21, 1  ;;  %p161_p8 = scmp.lt.s32.totalorder %s1295_s21, 3 }
   0xd   : > { %p1121_p9 = scmp.eq.s32.totalorder %s1355_s22, 0  ;;  %s175_s8 = sshll.u32 %s1564_s2, 4  ;;  %s176_s8 = int_to_ptr.hbm [resolvable:$true] %s175_s8 }
   0xe   : > { %p1383_p10 = pnand %p1057_p7, %p161_p8  ;;  %s1297_s9 = smov [#allocation3]  }
   0xf   : > { %s177_s10 = sshll.u32 %s1297_s9, 4  ;;  %s189_s13 = sshll.u32 %s1565_s3, 4  ;;  %s178_s10 = int_to_ptr.vmem [resolvable:$true] %s177_s10  ;;  %s190_s13 = int_to_ptr.hbm [resolvable:$true] %s189_s13 }
  0x10   : > { %p1110_p11 = pneg %p1383_p10  ;;  %s1298_s14 = smov 128  }
  0x11   : > { %s1299_s15 = smov 8   ;;  %s1300_s16 = smov [#allocation6]  }
  0x12   : > { %p1111_p12 = pnand %p1121_p9, %p1110_p11  ;;  %s191_s17 = sshll.u32 %s1300_s16, 4  ;;  %s192_s17 = int_to_ptr.vmem [resolvable:$true] %s191_s17 }
  0x13   : > { %218 = sbr.rel (%p1383_p10) target bundleno = 517 (0x205), region = 40 }
  0x14   : > { %1113 = dma.hbm_to_vmem [thread:$0]  (!%p1111_p12), %s176_s8, 6912, %s178_s10, [#allocation4], %s1298_s14, %s1298_s14, %s1299_s15  }
  0x15   : > { %1116 = dma.hbm_to_vmem [thread:$0]  (!%p1111_p12), %s190_s13, 6912, %s192_s17, [#allocation7], %s1298_s14, %s1298_s14, %s1299_s15  }
  0x18   : > { %1270 = dma.done.wait (%p1121_p9), [#allocation4], 6912  }
  0x19   : > { %1272 = vsyncadd (%p1121_p9), [#allocation4], 4294960384 }
  0x1a   : > { %1274 = dma.done.wait (%p1121_p9), [#allocation7], 6912  }
  0x1b   : > { %1276 = vsyncadd (%p1121_p9), [#allocation7], 4294960384  ;;  %p252_p13 = scmp.lt.s32.totalorder %s1355_s22, 1  ;;  %vm275_vm0 = vcmask 1041408   ;;  %v1077_v0 = vld [vmem:[%s1563_s1 + $0x40] sm:$0x3]  ;;  %v376_v21 = vlaneseq }
  0x1c   : > { %v1076_v1 = vld [vmem:[%s1563_s1 + $0x38] sm:$0xff]  ;;  %v1068_v2 = vld [vmem:[%s1563_s1 + $0x28] sm:$0x3]  ;;  %1078 = vmatpush.msk.msra.mxu2 %vm275_vm0, %v1077_v0  ;;  %v261_v3 = vld [vmem:[%s1563_s1 + $0x10] sm:$0x3]  ;;  %vm268_vm1 = vcmask 146432  }
  0x1d   : > { %s253_s23 = scalar_select %p252_p13, %s1355_s22, 1  ;;  %1069 = vmatpush.msk.msra.mxu0 %vm275_vm0, %v1068_v2  ;;  %v1075_v4 = vld [vmem:[%s1563_s1 + $0x30] sm:$0xff]  ;;  %1072 = vmatpush.msk.msra.mxu1 %vm275_vm0, %v261_v3  ;;  %v1067_v5 = vld [vmem:[%s1563_s1 + $0x20] sm:$0xff]  ;;  %v260_v6 = vld [vmem:[%s1563_s1 + $0x8] sm:$0xff]  ;;  %vm378_vm2 = vcmp.lt.s32.totalorder %v376_v21, 144  ;;  %v1301_v25 = vmov 0.0  }
  0x1e   : > { %v1066_v7 = vld [vmem:[%s1563_s1 + $0x18] sm:$0xff]  ;;  %363 = vmatpush.msra.mxu2 %v1076_v1  ;;  %v259_v9 = vld [vmem:[%s1563_s1] sm:$0xff]  ;;  %v434_v12 = vld [vmem:[#allocation3 + $0x78] sm:$0xff]  ;;  %380 = vst.msk [vmem:[#allocation2] ss:$8 sm:$0x3] %vm378_vm2, %v1301_v25 }
  0x1f   : > { %s1099_s25 = smul.u32 24, %s253_s23  ;;  %293 = vmatpush.msra.mxu0 %v1067_v5  ;;  %325 = vmatpush.msra.mxu1 %v260_v6  ;;  %v433_v13 = vld [vmem:[#allocation3 + $0x70] sm:$0xff]  ;;  %v432_v14 = vld [vmem:[#allocation3 + $0x68] sm:$0xff]  ;;  %v431_v16 = vld [vmem:[#allocation3 + $0x60] sm:$0xff]  ;;  %vm385_vm3 = vcmask 130048   ;;  %vm388_vm4 = vcmask 123904  }
  0x20   : > { %364 = vmatpush.msra.mxu2 %v1075_v4  ;;  %v430_v19 = vld [vmem:[#allocation3 + $0x58] sm:$0xff]  ;;  %v458_v22 = vld [vmem:[#allocation3 + $0x110] sm:$0xff]  ;;  %v457_v23 = vld [vmem:[#allocation3 + $0x108] sm:$0xff]  ;;  %386 = vst.msk [vmem:[#allocation2 + $0x8] sm:$0xff] %vm385_vm3, %v1301_v25  ;;  %vm466_vm5 = vcmask 1046528   ;;  %vm607_vm6 = vcmask 1045504  }
  0x21   : > { %s1421_s12 = scalar_lea.vmem %s1562_s0, %s1099_s25  ;;  %294 = vmatpush.msra.mxu0 %v1066_v7  ;;  %326 = vmatpush.msra.mxu1 %v259_v9  ;;  %v459_v20 = vld [vmem:[#allocation3 + $0x118] sm:$0xff]  ;;  %v456_v26 = vld [vmem:[#allocation3 + $0x100] sm:$0xff]  ;;  %v599_v27 = vld [vmem:[#allocation3 + $0x190] sm:$0xff]  ;;  %383 = vst.msk [vmem:[#allocation2 + $0x21] ss:$8 sm:$0x3] %vm378_vm2, %v1301_v25 }
  0x22   : > { %v334_v8 = vld [vmem:[%s1421_s12 + $0x2] sm:$0xff]  ;;  %v335_v15 = vld [vmem:[%s1421_s12 + $0xa] sm:$0xff]  ;;  %483 = vmatpush.msra.mxu3 %v457_v23  ;;  %v598_v30 = vld [vmem:[#allocation3 + $0x188] sm:$0xff]  ;;  %387 = vst.msk [vmem:[#allocation2 + $0x18] sm:$0xff] %vm385_vm3, %v1301_v25  ;;  %vm405_vm9 = vcmask 1040384   ;;  %s249_s11 = sand.u32 1, %s1287_s19  }
  0x23   : > { %v262_v10 = vld [vmem:[%s1421_s12 + $0x1] sm:$0xff]  ;;  %1079 = vmatmul.msk.f32.vlgmr.msra.gmra.mxu2 %vm268_vm1, %v334_v8  ;;  %534 = vmatpush.msrb.mxu1 %v434_v12  ;;  %v263_v17 = vld [vmem:[%s1421_s12 + $0x9] sm:$0xff]  ;;  %v436_v31 = vld [vmem:[#allocation3 + $0x88] sm:$0xff]  ;;  %389 = vst.msk [vmem:[#allocation2 + $0x28] sm:$0x3] %vm388_vm4, %v1301_v25  ;;  %s1098_s13 = sshll.u32 %s1355_s22, 4 }
  0x24   : > { %v257_v11 = vld [vmem:[%s1421_s12] sm:$0xff]  ;;  %1070 = vmatmul.msk.f32.vlgmr.msra.gmra.mxu0 %vm268_vm1, %v262_v10  ;;  %v258_v18 = vld [vmem:[%s1421_s12 + $0x8] sm:$0xff]  ;;  %484 = vmatpush.msra.mxu3 %v456_v26  ;;  %v597_v33 = vld [vmem:[#allocation3 + $0x180] sm:$0xff]  ;;  %s1064_s12 = sshll.u32 %s249_s11, 4  ;;  %s968_s16 = scalar_lea.hbm %s1567_s5, %s1098_s13 }
  0x25   : > { %1073 = vmatmul.msk.f32.vlgmr.msra.gmra.mxu1 %vm268_vm1, %v257_v11  ;;  %520 = vmatpush.msrb.mxu0 %v459_v20  ;;  %v600_v24 = vld [vmem:[#allocation3 + $0x198] sm:$0xff]  ;;  %v429_v28 = vld [vmem:[#allocation3 + $0x50] sm:$0xff]  ;;  %v428_v34 = vld [vmem:[#allocation3 + $0x48] sm:$0xff]  ;;  %s251_s17 = scalar_lea.vmem [#allocation8], %s1064_s12  ;;  %s971_s25 = sshll.u32 %s968_s16, 4  ;;  %s972_s25 = int_to_ptr.hbm [resolvable:$true] %s971_s25 }
  0x26   : > { %535 = vmatpush.msrb.mxu1 %v433_v13  ;;  %v455_v29 = vld [vmem:[#allocation3 + $0xf8] sm:$0xff]  ;;  %v454_v32 = vld [vmem:[#allocation3 + $0xf0] sm:$0xff]  ;;  %571 = vmatpush.msrb.mxu2 %v436_v31  ;;  %v453_v35 = vld [vmem:[#allocation3 + $0xe8] sm:$0xff]  ;;  %s969_s23 = sshll.u32 %s251_s17, 4  ;;  %s957_s22 = scalar_lea.sflag [#allocation5], %s249_s11  ;;  %s970_s23 = int_to_ptr.vmem [resolvable:$true] %s969_s23 }
  0x27   : > { %521 = vmatpush.msrb.mxu0 %v458_v22  ;;  %485 = vmatpush.msra.mxu3 %v455_v29  ;;  %v435_v36 = vld [vmem:[#allocation3 + $0x80] sm:$0xff]  ;;  %v596_v37 = vld [vmem:[#allocation3 + $0x178] sm:$0xff]  ;;  %v595_v41 = vld [vmem:[#allocation3 + $0x170] sm:$0xff]  ;;  %s1239_s26 = sshra.s32 %s972_s25, 4  ;;  %s1245_s8 = scalar_lea.hbm %s1567_s5, 32  ;;  %s1240_s26 = int_to_ptr.hbm [resolvable:$true] %s1239_s26 }
  0x28   : > { %536 = vmatpush.msrb.mxu1 %v432_v14  ;;  %v1455_v38 = vld [vmem:[#allocation2 + $0x8] sm:$0xff]  ;;  %v427_v39 = vld [vmem:[#allocation3 + $0x40] sm:$0xff]  ;;  %572 = vmatpush.msrb.mxu2 %v435_v36  ;;  %v594_v44 = vld [vmem:[#allocation3 + $0x168] sm:$0xff]  ;;  %s1241_s30 = scalar_lea.hbm %s1240_s26, 16  ;;  %p1246_p3 = scmp.lt.s32.totalorder %s1240_s26, %s1567_s5 }
  0x29   : > { %624 = vmatpush.msra.mxu0 %v600_v24  ;;  %486 = vmatpush.msra.mxu3 %v454_v32  ;;  %v452_v40 = vld [vmem:[#allocation3 + $0xe0] sm:$0xff]  ;;  %v426_v42 = vld [vmem:[#allocation3 + $0x38] sm:$0xff]  ;;  %v1459_v45 = vld [vmem:[#allocation2 + $0x18] sm:$0xff]  ;;  %p1242_p0 = scmp.ne.s32.totalorder %s1240_s26, %s1241_s30  ;;  %p1247_p4 = scmp.lt.s32.totalorder %s1245_s8, %s1241_s30 }
  0x2a   : > { %537 = vmatpush.msrb.mxu1 %v431_v16  ;;  %v451_v43 = vld [vmem:[#allocation3 + $0xd8] sm:$0xff]  ;;  %v425_v47 = vld [vmem:[#allocation3 + $0x30] sm:$0xff]  ;;  %v593_v49 = vld [vmem:[#allocation3 + $0x160] sm:$0xff]  ;;  %v1462_v51 = vrot.slane %v1459_v45, 1  ;;  %v1470_v5 = vrot.slane %v1459_v45, 2 }
  0x2b   : > { %1080 = vmatmul.msk.f32.gmra.mxu2 %vm268_vm1, %v335_v15  ;;  %625 = vmatpush.msra.mxu0 %v599_v27  ;;  %v438_v46 = vld [vmem:[#allocation2 + $0x8] sm:$0xfe]  ;;  %v450_v48 = vld [vmem:[#allocation3 + $0xd0] sm:$0xff]  ;;  %v424_v52 = vld [vmem:[#allocation3 + $0x28] sm:$0xff]  ;;  %p1243_p1 = pnand %p1242_p0, %p1372_p5  ;;  %p1248_p7 = por %p1247_p4, %p1246_p3 }
  0x2c   : > { %1071 = vmatmul.msk.f32.gmra.mxu0 %vm268_vm1, %v263_v17  ;;  %538 = vmatpush.msrb.mxu1 %v430_v19  ;;  %v470_v50 = vrot.slane %v438_v46, 1  ;;  %v449_v54 = vld [vmem:[#allocation3 + $0xc8] sm:$0xff]  ;;  %v592_v55 = vld [vmem:[#allocation3 + $0x158] sm:$0xff]  ;;  %v423_v56 = vld [vmem:[#allocation3 + $0x20] sm:$0xff] }
  0x2d   : > { %1074 = vmatmul.msk.f32.gmra.mxu1 %vm268_vm1, %v258_v18  ;;  %626 = vmatpush.msra.mxu0 %v598_v30  ;;  %v448_v57 = vld [vmem:[#allocation3 + $0xc0] sm:$0xff]  ;;  %v591_v58 = vld [vmem:[#allocation3 + $0x150] sm:$0xff]  ;;  %v422_v59 = vld [vmem:[#allocation3 + $0x18] sm:$0xff]  ;;  %p1244_p2 = pneg %p1243_p1 }
  0x2e   : > { %539 = vmatpush.msrb.mxu1 %v429_v28  ;;  %487 = vmatpush.msra.mxu3 %v453_v35  ;;  %v472_v53 = vsel %vm466_vm5, %v470_v50, %v1462_v51  ;;  %v447_v60 = vld [vmem:[#allocation3 + $0xb8] sm:$0xff]  ;;  %v590_v61 = vld [vmem:[#allocation3 + $0x148] sm:$0xff]  ;;  %v421_v63 = vld [vmem:[#allocation3 + $0x10] sm:$0xff] }
  0x2f   : > { %627 = vmatpush.msra.mxu0 %v597_v33  ;;  %v440_v62 = vld [vmem:[#allocation2 + $0x28] sm:$0x1]  ;;  %v602_v0 = vld [vmem:[#allocation3 + $0x1a8] sm:$0xff]  ;;  %v446_v1 = vld [vmem:[#allocation3 + $0xb0] sm:$0xff]  ;;  %p1249_p8 = pnand %p1248_p7, %p1244_p2 }
  0x30   : > { %540 = vmatpush.msrb.mxu1 %v428_v34  ;;  %488 = vmatpush.msra.mxu3 %v452_v40  ;;  %v475_v2 = vrot.slane %v440_v62, 1  ;;  %v589_v3 = vld [vmem:[#allocation3 + $0x140] sm:$0xff]  ;;  %v581_v4 = vld [vmem:[#allocation2 + $0x8] sm:$0xfc]  ;;  %v420_v6 = vld [vmem:[#allocation3 + $0x8] sm:$0xff] }
  0x31   : > { %628 = vmatpush.msra.mxu0 %v596_v37  ;;  %661 = vmatpush.msra.mxu2 %v602_v0  ;;  %v445_v8 = vld [vmem:[#allocation3 + $0xa8] sm:$0xff]  ;;  %v588_v9 = vld [vmem:[#allocation3 + $0x138] sm:$0xff]  ;;  %v611_v10 = vrot.slane %v581_v4, 2  ;;  %v601_v11 = vld [vmem:[#allocation3 + $0x1a0] sm:$0xff] }
  0x32   : > { %541 = vmatpush.msrb.mxu1 %v427_v39  ;;  %489 = vmatpush.msra.mxu3 %v451_v43  ;;  %v476_v7 = vsel %vm466_vm5, %v1462_v51, %v475_v2  ;;  %v419_v12 = vld [vmem:[#allocation3] sm:$0xff]  ;;  %v587_v15 = vld [vmem:[#allocation3 + $0x130] sm:$0xff]  ;;  %v443_v16 = vld [vmem:[#allocation3 + $0x98] sm:$0xff] }
  0x33   : > { %1083 = vmatmul.msk.f32.vlgmr.msrb.gmra.mxu2 %vm385_vm3, %v1455_v38  ;;  %629 = vmatpush.msra.mxu0 %v595_v41  ;;  %v613_v13 = vsel %vm607_vm6, %v611_v10, %v1470_v5  ;;  %v444_v14 = vld [vmem:[#allocation3 + $0xa0] sm:$0xff]  ;;  %v586_v17 = vld [vmem:[#allocation3 + $0x128] sm:$0xff]  ;;  %v442_v18 = vld [vmem:[#allocation3 + $0x90] sm:$0xff] }
  0x34   : > { %542 = vmatpush.msrb.mxu1 %v426_v42  ;;  %490 = vmatpush.msra.mxu3 %v450_v48  ;;  %v585_v19 = vld [vmem:[#allocation3 + $0x120] sm:$0xff]  ;;  %v583_v20 = vld [vmem:[#allocation2 + $0x28] sm:$0x3]  ;;  %v1483_v25 = vld [vmem:[%s1566_s4] sm:$0xf] }
  0x35   : > { %630 = vmatpush.msra.mxu0 %v594_v44  ;;  %662 = vmatpush.msra.mxu2 %v601_v11  ;;  %v616_v21 = vrot.slane %v583_v20, 2  ;;  %v391_v27 = vperm.slane %v1483_v25, 0  ;;  %v394_v30 = vperm.slane %v1483_v25, 1  ;;  %v739_v2 = vld [vmem:[#allocation6 + $0x118] sm:$0xff]  ;;  %v738_v4 = vld [vmem:[#allocation6 + $0x110] sm:$0xff]  ;;  %v736_v10 = vld [vmem:[#allocation6 + $0x100] sm:$0xff] }
  0x36   : > { %543 = vmatpush.msrb.mxu1 %v425_v47  ;;  %1081 = vmatmul.msk.f32.vlgmr.msrb.gmra.mxu0 %vm385_vm3, %v472_v53  ;;  %v878_v11 = vld [vmem:[#allocation6 + $0x190] sm:$0xff]  ;;  %v875_v20 = vld [vmem:[#allocation6 + $0x178] sm:$0xff] }
  0x37   : > { %631 = vmatpush.msra.mxu0 %v593_v49  ;;  %491 = vmatpush.msra.mxu3 %v449_v54  ;;  %v617_v22 = vsel %vm607_vm6, %v1470_v5, %v616_v21  ;;  %v707_v21 = vld [vmem:[#allocation6 + $0x40] sm:$0xff] }
  0x38   : > { %544 = vmatpush.msrb.mxu1 %v424_v52 }
  0x39   : > { %632 = vmatpush.msra.mxu0 %v592_v55  ;;  %492 = vmatpush.msra.mxu3 %v448_v57 }
  0x3a   : > { %545 = vmatpush.msrb.mxu1 %v423_v56 }
  0x3b   : > { %1084 = vmatmul.msk.f32.gmra.mxu2 %vm385_vm3, %v1459_v45  ;;  %633 = vmatpush.msra.mxu0 %v591_v58 }
  0x3c   : > { %546 = vmatpush.msrb.mxu1 %v422_v59  ;;  %493 = vmatpush.msra.mxu3 %v447_v60 }
  0x3d   : > { %634 = vmatpush.msra.mxu0 %v590_v61 }
  0x3e   : > { %547 = vmatpush.msrb.mxu1 %v421_v63  ;;  %494 = vmatpush.msra.mxu3 %v446_v1  ;;  %v714_v1 = vld [vmem:[#allocation6 + $0x78] sm:$0xff] }
  0x3f   : > { %635 = vmatpush.msra.mxu0 %v589_v3  ;;  %813 = vmatpush.msrb.mxu2 %v714_v1  ;;  %v713_v3 = vld [vmem:[#allocation6 + $0x70] sm:$0xff]  ;;  %v865_v1 = vld [vmem:[#allocation6 + $0x128] sm:$0xff] }
  0x40   : > { %548 = vmatpush.msrb.mxu1 %v420_v6  ;;  %1082 = vmatmul.msk.f32.gmra.mxu0 %vm385_vm3, %v476_v7  ;;  %v712_v6 = vld [vmem:[#allocation6 + $0x68] sm:$0xff] }
  0x41   : > { %495 = vmatpush.msra.mxu3 %v445_v8  ;;  %636 = vmatpush.msra.mxu0 %v588_v9  ;;  %v737_v7 = vld [vmem:[#allocation6 + $0x108] sm:$0xff]  ;;  %v879_v8 = vld [vmem:[#allocation6 + $0x198] sm:$0xff]  ;;  %v711_v9 = vld [vmem:[#allocation6 + $0x60] sm:$0xff] }
  0x42   : > { %549 = vmatpush.msrb.mxu1 %v419_v12  ;;  %814 = vmatpush.msrb.mxu2 %v713_v3  ;;  %v710_v12 = vld [vmem:[#allocation6 + $0x58] sm:$0xff]  ;;  %v864_v3 = vld [vmem:[#allocation6 + $0x120] sm:$0xff] }
  0x43   : > { %1085 = vmatmul.msk.f32.vlgmr.msra.gmra.mxu2 %vm385_vm3, %v613_v13  ;;  %496 = vmatpush.msra.mxu3 %v444_v14  ;;  %v735_v13 = vld [vmem:[#allocation6 + $0xf8] sm:$0xff]  ;;  %v877_v14 = vld [vmem:[#allocation6 + $0x188] sm:$0xff] }
  0x44   : > { %637 = vmatpush.msra.mxu0 %v587_v15  ;;  %799 = vmatpush.msra.mxu1 %v739_v2  ;;  %v709_v15 = vld [vmem:[#allocation6 + $0x50] sm:$0xff] }
  0x45   : > { %497 = vmatpush.msra.mxu3 %v443_v16  ;;  %815 = vmatpush.msrb.mxu2 %v712_v6  ;;  %v734_v16 = vld [vmem:[#allocation6 + $0xf0] sm:$0xff] }
  0x46   : > { %638 = vmatpush.msra.mxu0 %v586_v17  ;;  %800 = vmatpush.msra.mxu1 %v738_v4  ;;  %v876_v17 = vld [vmem:[#allocation6 + $0x180] sm:$0xff]  ;;  %v722_v2 = vld [vmem:[#allocation6 + $0x90] sm:$0xff] }
  0x47   : > { %498 = vmatpush.msra.mxu3 %v442_v18  ;;  %816 = vmatpush.msrb.mxu2 %v711_v9  ;;  %v708_v18 = vld [vmem:[#allocation6 + $0x48] sm:$0xff] }
  0x48   : > { %639 = vmatpush.msra.mxu0 %v585_v19  ;;  %v733_v19 = vld [vmem:[#allocation6 + $0xe8] sm:$0xff] }
  0x49   : > { %762 = vmatpush.msrb.mxu3 %v737_v7  ;;  %817 = vmatpush.msrb.mxu2 %v710_v12  ;;  %v881_v9 = vld [vmem:[#allocation6 + $0x1a8] sm:$0xff] }
  0x4b   : > { %1086 = vmatmul.msk.f32.gmra.mxu2 %vm385_vm3, %v617_v22  ;;  %763 = vmatpush.msrb.mxu3 %v736_v10  ;;  %v732_v22 = vld [vmem:[#allocation6 + $0xe0] sm:$0xff]  ;;  %v716_v10 = vld [vmem:[#allocation6 + $0x88] sm:$0xff] }
  0x4c   : > { %818 = vmatpush.msrb.mxu2 %v709_v15  ;;  %850 = vmatpush.msrb.mxu0 %v716_v10  ;;  %v880_v15 = vld [vmem:[#allocation6 + $0x1a0] sm:$0xff] }
  0x4d   : > { %764 = vmatpush.msrb.mxu3 %v735_v13 }
  0x4e   : > { %819 = vmatpush.msrb.mxu2 %v708_v18  ;;  %v675_v18 = vperm.slane %v1483_v25, 3 }
  0x4f   : > { %765 = vmatpush.msrb.mxu3 %v734_v16  ;;  %v715_v16 = vld [vmem:[#allocation6 + $0x80] sm:$0xff] }
  0x50   : > { %820 = vmatpush.msrb.mxu2 %v707_v21  ;;  %851 = vmatpush.msrb.mxu0 %v715_v16 }
  0x51   : > { %766 = vmatpush.msrb.mxu3 %v733_v19 }
  0x53   : > { %767 = vmatpush.msrb.mxu3 %v732_v22 }
  0xa1   : > { %v296_v23 = vpop.f32.mrf.mxu0 }
  0xa2   : > { %v328_v24 = vpop.f32.mrf.mxu1 }
  0xa3   : > { %v329_v26 = vadd.f32 %v328_v24, %v296_v23  ;;  %v874_v23 = vld [vmem:[#allocation6 + $0x170] sm:$0xff]  ;;  %v706_v24 = vld [vmem:[#allocation6 + $0x38] sm:$0xff] }
  0xa4   : > { %821 = vmatpush.msrb.mxu2 %v706_v24 }
  0xa6   : > { %v366_v28 = vpop.f32.mrf.mxu2 }
  0xa7   : > { %v1487_v29 = vadd.f32 %v366_v28, %v329_v26  ;;  %v731_v26 = vld [vmem:[#allocation6 + $0xd8] sm:$0xff] }
  0xa8   : > { %768 = vmatpush.msrb.mxu3 %v731_v26 }
  0xa9   : > { %v392_v31 = vmul.f32 %v391_v27, %v1487_v29  ;;  %v299_v32 = vpop.f32.mrf.mxu0 }
  0xaa   : > { %v331_v33 = vpop.f32.mrf.mxu1 }
  0xab   : > { %v395_v34 = vadd.f32 %v394_v30, %v392_v31  ;;  %v332_v35 = vadd.f32 %v331_v33, %v299_v32  ;;  %v705_v32 = vld [vmem:[#allocation6 + $0x30] sm:$0xff] }
  0xac   : > { %v730_v33 = vld [vmem:[#allocation6 + $0xd0] sm:$0xff]  ;;  %822 = vmatpush.msrb.mxu2 %v705_v32 }
  0xad   : > { %vm397_vm7 = vcmp.gt.f32.partialorder %v395_v34, 0.0  ;;  %v399_v36 = vmul.f32 0.01, %v395_v34  ;;  %769 = vmatpush.msrb.mxu3 %v730_v33 }
  0xae   : > { %v369_v37 = vpop.f32.mrf.mxu2 }
  0xaf   : > { %v401_v39 = vsel %vm397_vm7, %v395_v34, %v399_v36  ;;  %v1491_v40 = vadd.f32 %v369_v37, %v332_v35  ;;  %v872_v34 = vld [vmem:[#allocation6 + $0x160] sm:$0xff]  ;;  %v704_v36 = vld [vmem:[#allocation6 + $0x28] sm:$0xff] }
  0xb0   : > { %v406_v41 = vrot.slane %v401_v39, 7  ;;  %v729_v39 = vld [vmem:[#allocation6 + $0xc8] sm:$0xff]  ;;  %823 = vmatpush.msrb.mxu2 %v704_v36 }
  0xb1   : > { %v393_v42 = vmul.f32 %v391_v27, %v1491_v40  ;;  %v873_v27 = vld [vmem:[#allocation6 + $0x168] sm:$0xff]  ;;  %770 = vmatpush.msrb.mxu3 %v729_v39 }
  0xb2   : > { %412 = vst [vmem:[#allocation2] sm:$0xfe] %v406_v41 }
  0xb3   : > { %v396_v43 = vadd.f32 %v394_v30, %v393_v42  ;;  %v718_v30 = vld [vmem:[#allocation2 + $0x8] sm:$0xfe]  ;;  %v1501_v31 = vpop.f32.mrf.mxu0  ;;  %v703_v42 = vld [vmem:[#allocation6 + $0x20] sm:$0xff] }
  0xb4   : > { %v749_v35 = vrot.slane %v718_v30, 1  ;;  %824 = vmatpush.msrb.mxu2 %v703_v42 }
  0xb5   : > { %vm398_vm8 = vcmp.gt.f32.partialorder %v396_v43, 0.0  ;;  %v400_v44 = vmul.f32 0.01, %v396_v43 }
  0xb6   : > { %v1499_v28 = vpop.f32.mrf.mxu2  ;;  %v751_v37 = vsel %vm466_vm5, %v749_v35, %v1462_v51 }
  0xb7   : > { %v402_v46 = vsel %vm398_vm8, %v396_v43, %v400_v44  ;;  %v728_v43 = vld [vmem:[#allocation6 + $0xc0] sm:$0xff]  ;;  %v870_v44 = vld [vmem:[#allocation6 + $0x150] sm:$0xff] }
  0xb8   : > { %v407_v47 = vrot.slane %v402_v46, 7  ;;  %v702_v46 = vld [vmem:[#allocation6 + $0x18] sm:$0xff]  ;;  %771 = vmatpush.msrb.mxu3 %v728_v43 }
  0xb9   : > { %v415_v48 = vld [vmem:[#allocation2] sm:$0xff]  ;;  %825 = vmatpush.msrb.mxu2 %v702_v46 }
  0xba   : > { %v437_v49 = vld [vmem:[#allocation2] sm:$0xfe]  ;;  %v408_v52 = vsel %vm405_vm9, %v406_v41, %v407_v47  ;;  %414 = vst [vmem:[#allocation2 + $0x20] sm:$0x1] %v407_v47  ;;  %550 = vmatmul.f32.vlgmr.msrb.gmra.mxu1 %v415_v48  ;;  %v871_v41 = vld [vmem:[#allocation6 + $0x158] sm:$0xff]  ;;  %v869_v48 = vld [vmem:[#allocation6 + $0x148] sm:$0xff] }
  0xbb   : > { %v580_v50 = vld [vmem:[#allocation2] sm:$0xfc]  ;;  %v467_v53 = vrot.slane %v437_v49, 1  ;;  %v609_v55 = vrot.slane %v408_v52, 2  ;;  %v468_v56 = vrot.slane %v408_v52, 1  ;;  %902 = vmatpush.msrb.mxu1 %v879_v8  ;;  %v727_v47 = vld [vmem:[#allocation6 + $0xb8] sm:$0xff] }
  0xbc   : > { %v608_v54 = vrot.slane %v580_v50, 2  ;;  %v720_v49 = vld [vmem:[#allocation2 + $0x28] sm:$0x1]  ;;  %v701_v50 = vld [vmem:[#allocation6 + $0x10] sm:$0xff]  ;;  %772 = vmatpush.msrb.mxu3 %v727_v47 }
  0xbd   : > { %v469_v57 = vsel %vm466_vm5, %v467_v53, %v468_v56  ;;  %903 = vmatpush.msrb.mxu1 %v878_v11  ;;  %v868_v53 = vld [vmem:[#allocation6 + $0x140] sm:$0xff]  ;;  %826 = vmatpush.msrb.mxu2 %v701_v50 }
  0xbe   : > { %v610_v58 = vsel %vm607_vm6, %v608_v54, %v609_v55  ;;  %499 = vmatmul.f32.vlgmr.msra.gmra.mxu3 %v469_v57  ;;  %v754_v54 = vrot.slane %v720_v49, 1  ;;  %v700_v57 = vld [vmem:[#allocation6 + $0x8] sm:$0xff] }
  0xbf   : > { %640 = vmatmul.f32.vlgmr.msra.gmra.mxu0 %v610_v58  ;;  %904 = vmatpush.msrb.mxu1 %v877_v14  ;;  %v672_v14 = vperm.slane %v1483_v25, 2 }
  0xc0   : > { %v755_v58 = vsel %vm466_vm5, %v1462_v51, %v754_v54  ;;  %827 = vmatpush.msrb.mxu2 %v700_v57  ;;  %v860_v57 = vld [vmem:[#allocation2 + $0x8] sm:$0xfc] }
  0xc1   : > { %v439_v59 = vld [vmem:[#allocation2 + $0x20] sm:$0x1]  ;;  %905 = vmatpush.msrb.mxu1 %v876_v17 }
  0xc2   : > { %v582_v60 = vld [vmem:[#allocation2 + $0x20] sm:$0x3]  ;;  %553 = vmatmul.f32.gmra.mxu1 %v408_v52  ;;  %v473_v61 = vrot.slane %v439_v59, 1  ;;  %v726_v52 = vld [vmem:[#allocation6 + $0xb0] sm:$0xff]  ;;  %v725_v59 = vld [vmem:[#allocation6 + $0xa8] sm:$0xff] }
  0xc3   : > { %v614_v62 = vrot.slane %v582_v60, 2  ;;  %906 = vmatpush.msrb.mxu1 %v875_v20  ;;  %773 = vmatpush.msrb.mxu3 %v726_v52  ;;  %v867_v60 = vld [vmem:[#allocation6 + $0x138] sm:$0xff] }
  0xc4   : > { %v474_v63 = vsel %vm466_vm5, %v468_v56, %v473_v61  ;;  %v526_v56 = vpop.f32.mrf.mxu0  ;;  %v699_v61 = vld [vmem:[#allocation6] sm:$0xff] }
  0xc5   : > { %v615_v0 = vsel %vm607_vm6, %v609_v55, %v614_v62  ;;  %907 = vmatpush.msrb.mxu1 %v874_v23  ;;  %v577_v55 = vpop.f32.mrf.mxu2  ;;  %774 = vmatpush.msrb.mxu3 %v725_v59  ;;  %v724_v62 = vld [vmem:[#allocation6 + $0xa0] sm:$0xff] }
  0xc6   : > { %502 = vmatmul.f32.gmra.mxu3 %v474_v63  ;;  %v866_v63 = vld [vmem:[#allocation6 + $0x130] sm:$0xff]  ;;  %828 = vmatpush.msrb.mxu2 %v699_v61 }
  0xc7   : > { %643 = vmatmul.f32.gmra.mxu0 %v615_v0  ;;  %908 = vmatpush.msrb.mxu1 %v873_v27  ;;  %v723_v0 = vld [vmem:[#allocation6 + $0x98] sm:$0xff] }
  0xc8   : > { %775 = vmatpush.msrb.mxu3 %v724_v62 }
  0xc9   : > { %909 = vmatpush.msrb.mxu1 %v872_v34 }
  0xca   : > { %1087 = vmatmul.msk.f32.vlgmr.msra.gmra.mxu1 %vm385_vm3, %v751_v37  ;;  %776 = vmatpush.msrb.mxu3 %v723_v0 }
  0xcb   : > { %910 = vmatpush.msrb.mxu1 %v871_v41 }
  0xcc   : > { %777 = vmatpush.msrb.mxu3 %v722_v2 }
  0xcd   : > { %911 = vmatpush.msrb.mxu1 %v870_v44  ;;  %v664_v4 = vpop.f32.mrf.mxu2 }
  0xce   : > { %939 = vmatpush.msra.mxu3 %v881_v9 }
  0xcf   : > { %912 = vmatpush.msrb.mxu1 %v869_v48  ;;  %1089 = vmatmul.msk.f32.vlgmr.msrb.gmra.mxu0 %vm385_vm3, %v1455_v38 }
  0xd0   : > { %940 = vmatpush.msra.mxu3 %v880_v15 }
  0xd1   : > { %913 = vmatpush.msrb.mxu1 %v868_v53 }
  0xd2   : > { %1088 = vmatmul.msk.f32.gmra.mxu1 %vm385_vm3, %v755_v58  ;;  %v889_v58 = vrot.slane %v860_v57, 2 }
  0xd3   : > { %914 = vmatpush.msrb.mxu1 %v867_v60  ;;  %v862_v60 = vld [vmem:[#allocation2 + $0x28] sm:$0x3] }
  0xd4   : > { %v891_v59 = vsel %vm607_vm6, %v889_v58, %v1470_v5  ;;  %v894_v61 = vrot.slane %v862_v60, 2 }
  0xd5   : > { %915 = vmatpush.msrb.mxu1 %v866_v63  ;;  %v667_v21 = vpop.f32.mrf.mxu2 }
  0xd6   : > { %v895_v62 = vsel %vm607_vm6, %v1470_v5, %v894_v61 }
  0xd7   : > { %916 = vmatpush.msrb.mxu1 %v865_v1  ;;  %1090 = vmatmul.msk.f32.gmra.mxu0 %vm385_vm3, %v1459_v45 }
  0xd9   : > { %917 = vmatpush.msrb.mxu1 %v864_v3 }
 0x137   : > { %v551_v51 = vpop.f32.mrf.mxu1 }
 0x13c   : > { %v641_v6 = vpop.f32.mrf.mxu0 }
 0x13d   : > { %v665_v12 = vadd.f32 %v664_v4, %v641_v6 }
 0x13f   : > { %v554_v23 = vpop.f32.mrf.mxu1 }
 0x141   : > { %v500_v7 = vpop.f32.mrf.mxu3 }
 0x142   : > { %v524_v8 = vadd.f32 %v1501_v31, %v500_v7 }
 0x144   : > { %v552_v11 = vadd.f32 %v551_v51, %v524_v8  ;;  %v644_v24 = vpop.f32.mrf.mxu0 }
 0x145   : > { %v668_v30 = vadd.f32 %v667_v21, %v644_v24 }
 0x146   : > { %v575_v13 = vadd.f32 %v1499_v28, %v552_v11 }
 0x147   : > { %v802_v63 = vpop.f32.mrf.mxu1 }
 0x148   : > { %v670_v17 = vadd.f32 %v665_v12, %v575_v13 }
 0x149   : > { %v503_v19 = vpop.f32.mrf.mxu3 }
 0x14a   : > { %v673_v20 = vmul.f32 %v672_v14, %v670_v17  ;;  %v527_v22 = vadd.f32 %v526_v56, %v503_v19 }
 0x14c   : > { %v676_v26 = vadd.f32 %v675_v18, %v673_v20  ;;  %v555_v27 = vadd.f32 %v554_v23, %v527_v22  ;;  %v853_v4 = vpop.f32.mrf.mxu0 }
 0x14e   : > { %vm678_vm10 = vcmp.gt.f32.partialorder %v676_v26, 0.0  ;;  %v680_v28 = vmul.f32 0.01, %v676_v26  ;;  %v578_v31 = vadd.f32 %v577_v55, %v555_v27 }
 0x14f   : > { %v805_v1 = vpop.f32.mrf.mxu1 }
 0x150   : > { %v682_v32 = vsel %vm678_vm10, %v676_v26, %v680_v28  ;;  %v671_v33 = vadd.f32 %v668_v30, %v578_v31 }
 0x151   : > { %v686_v25 = vrot.slane %v682_v32, 7 }
 0x152   : > { %v674_v34 = vmul.f32 %v672_v14, %v671_v33 }
 0x153   : > { %692 = vst [vmem:[#allocation2] sm:$0xfe] %v686_v25 }
 0x154   : > { %v677_v38 = vadd.f32 %v675_v18, %v674_v34  ;;  %v856_v15 = vpop.f32.mrf.mxu0 }
 0x156   : > { %vm679_vm11 = vcmp.gt.f32.partialorder %v677_v38, 0.0  ;;  %v681_v35 = vmul.f32 0.01, %v677_v38 }
 0x158   : > { %v683_v36 = vsel %vm679_vm11, %v677_v38, %v681_v35 }
 0x159   : > { %v687_v37 = vrot.slane %v683_v36, 7 }
 0x15a   : > { %v695_v39 = vld [vmem:[#allocation2] sm:$0xff] }
 0x15b   : > { %v717_v41 = vld [vmem:[#allocation2] sm:$0xfe]  ;;  %v688_v43 = vsel %vm405_vm9, %v686_v25, %v687_v37  ;;  %694 = vst [vmem:[#allocation2 + $0x20] sm:$0x1] %v687_v37  ;;  %829 = vmatmul.f32.vlgmr.msrb.gmra.mxu2 %v695_v39 }
 0x15c   : > { %v859_v42 = vld [vmem:[#allocation2] sm:$0xfc]  ;;  %v746_v44 = vrot.slane %v717_v41, 1  ;;  %v747_v47 = vrot.slane %v688_v43, 1  ;;  %v887_v48 = vrot.slane %v688_v43, 2 }
 0x15d   : > { %v886_v46 = vrot.slane %v859_v42, 2 }
 0x15e   : > { %v748_v45 = vsel %vm466_vm5, %v746_v44, %v747_v47 }
 0x15f   : > { %v888_v49 = vsel %vm607_vm6, %v886_v46, %v887_v48  ;;  %778 = vmatmul.f32.vlgmr.msrb.gmra.mxu3 %v748_v45 }
 0x160   : > { %918 = vmatmul.f32.vlgmr.msrb.gmra.mxu1 %v888_v49 }
 0x162   : > { %v719_v50 = vld [vmem:[#allocation2 + $0x20] sm:$0x1] }
 0x163   : > { %v861_v52 = vld [vmem:[#allocation2 + $0x20] sm:$0x3]  ;;  %832 = vmatmul.f32.gmra.mxu2 %v688_v43  ;;  %v752_v53 = vrot.slane %v719_v50, 1 }
 0x164   : > { %v892_v54 = vrot.slane %v861_v52, 2 }
 0x165   : > { %v753_v55 = vsel %vm466_vm5, %v747_v47, %v752_v53 }
 0x166   : > { %v893_v56 = vsel %vm607_vm6, %v887_v48, %v892_v54 }
 0x167   : > { %781 = vmatmul.f32.gmra.mxu3 %v753_v55 }
 0x168   : > { %921 = vmatmul.f32.gmra.mxu1 %v893_v56 }
 0x16f   : > { %1091 = vmatmul.msk.f32.vlgmr.msra.gmra.mxu3 %vm385_vm3, %v891_v59 }
 0x177   : > { %1092 = vmatmul.msk.f32.gmra.mxu3 %vm385_vm3, %v895_v62 }
 0x1dd   : > { %v919_v7 = vpop.f32.mrf.mxu1 }
 0x1de   : > { %v830_v51 = vpop.f32.mrf.mxu2 }
 0x1e2   : > { %v779_v0 = vpop.f32.mrf.mxu3 }
 0x1e3   : > { %v803_v3 = vadd.f32 %v802_v63, %v779_v0 }
 0x1e5   : > { %v831_v6 = vadd.f32 %v830_v51, %v803_v3  ;;  %v922_v16 = vpop.f32.mrf.mxu1 }
 0x1e6   : > { %v833_v5 = vpop.f32.mrf.mxu2 }
 0x1e7   : > { %v854_v9 = vadd.f32 %v853_v4, %v831_v6 }
 0x1ea   : > { %v782_v2 = vpop.f32.mrf.mxu3 }
 0x1eb   : > { %v806_v10 = vadd.f32 %v805_v1, %v782_v2 }
 0x1ed   : > { %v834_v13 = vadd.f32 %v833_v5, %v806_v10 }
 0x1ef   : > { %v857_v18 = vadd.f32 %v856_v15, %v834_v13 }
 0x1f2   : > { %v942_v8 = vpop.f32.mrf.mxu3 }
 0x1f3   : > { %v943_v11 = vadd.f32 %v942_v8, %v919_v7 }
 0x1f5   : > { %v948_v12 = vadd.f32 %v943_v11, %v854_v9 }
 0x1f7   : > { %v952_v14 = vadd.f32 %v948_v12, %v1487_v29 }
 0x1f9   : > { %954 = vst [vmem:[%s251_s17] sm:$0xff] %v952_v14 }
 0x1fa   : > { %v945_v17 = vpop.f32.mrf.mxu3 }
 0x1fb   : > { %v946_v19 = vadd.f32 %v945_v17, %v922_v16 }
 0x1fd   : > { %v949_v20 = vadd.f32 %v946_v19, %v857_v18 }
 0x1ff   : > { %v953_v21 = vadd.f32 %v949_v20, %v1491_v40 }
 0x201   : > { %955 = vst [vmem:[%s251_s17 + $0x8] sm:$0xff] %v953_v21 }
 0x202   : > { %1252 = shalt.err (!%p1249_p8)
}
 0x203   : > { %s1302_s11 = smov 128   ;;  %s1303_s12 = smov 8  }
 0x204   : > { %1108 = dma.vmem_to_hbm [thread:$0]  (%p1372_p5), %s970_s23, 256, %s972_s25, %s957_s22, %s1302_s11, %s1302_s11, %s1303_s12  }
 0x205 PF: > { %p1125_p9 = scmp.ge.s32.totalorder %s1295_s21, 2  ;;  %s986_s13 = sand.u32 1, %s1283_s18  }
 0x206   : > { %s987_s14 = scalar_lea.sflag [#allocation5], %s986_s13 }
 0x207   : > { %p1118_p10 = pnand %p1125_p9, %p1376_p6 }
 0x209   : > { %p1119_p11 = pneg %p1118_p10 }
 0x20b   : > { %1278 = dma.done.wait (%p1119_p11), %s987_s14, 256  }
 0x20c   : > { %1280 = vsyncadd (%p1119_p11), %s987_s14, 4294967040  ;;  %p17_p12 = scmp.ge.s32.totalorder %s1359_s24, 4   ;;  %s1571_s18 = smov %s1287_s19 }
 0x20d   : > { %s1572_s19 = smov %s1291_s20  ;;  %s1573_s20 = smov %s1370_s27 }
 0x20e   : > { %s1574_s21 = smov %s1359_s24  ;;  %19 = sbr.rel (!%p17_p12) target bundleno = 5 (0x5), region = 91 }
 0x213   :  { %993 = vsyncpa [#allocation4], 1 }
 0x214   :  { %995 = vsyncpa [#allocation4 + $0x1], 1 }
 0x215   :  { %996 = vsyncpa [#allocation7], 1 }
 0x216   :  { %997 = vsyncpa [#allocation5], 1 }
 0x217   :  { %999 = vsyncpa [#allocation5 + $0x1], 1 }

</bundles_post_ra>
